<compile_context>
chip_gen: v7x
topology: tpu7x:2x2x1
jax: 0.10.0
libtpu: 0.0.40
codegen_flags: <defaults>
</compile_context>

<pallas_src>
import functools

import jax
import jax.numpy as jnp
from jax.experimental import pallas as pl
from jax.experimental.pallas import tpu as pltpu
from jax.scipy.linalg import block_diag


# ----------------------------- configuration -----------------------------
BATCH = 2
N_AGENTS = 2          # self.n
STATE_DIM = 16        # per-agent state dim
ACTION_NUM = 6
HIDDEN = (64, 32)     # hidden_size (small version of default [200, 100])
DEC_AGENTS = False    # all n heads are evaluated

MAX_BATCH_BLOCK = 2048   # batch tile cap; per-step VMEM stays << scoped limit
LANE = 128               # lane width: pad hidden dims to multiples of this


def _round_up(v, m):
    return ((v + m - 1) // m) * m


# ------------------------------- kernel ----------------------------------
def _policy_kernel(n_agents, action_num,
                   x_ref, w1_ref, b1_ref, w2_ref, b2_ref,
                   whc_ref, bhc_ref, wob_ref, boc_ref,
                   out_ref):
    """Forward pass for one batch block, all agents fused.

    x_ref  : (TB, n*state_dim)
    w1_ref : (n*state_dim, H1p),        b1_ref : (1, H1p)
    w2_ref : (H1p, H2p),                b2_ref : (1, H2p)
    whc_ref: (H2p, n*Hhp)   (concat),   bhc_ref: (1, n*Hhp)
    wob_ref: (n*Hhp, n*A)   (blockdiag),boc_ref: (1, n*A)
    out_ref: (TB, n*A)  -- softmax probabilities, agent-major lane packing
    (padded weight rows/cols are zero; ReLU(0)=0 keeps the padding inert)
    """
    x = x_ref[...]

    # shared trunk: two Linear+ReLU layers (MXU matmuls, f32 accumulation)
    h = jnp.dot(x, w1_ref[...], preferred_element_type=jnp.float32) + b1_ref[...]
    h = jnp.maximum(h, 0.0)
    h = jnp.dot(h, w2_ref[...], preferred_element_type=jnp.float32) + b2_ref[...]
    h = jnp.maximum(h, 0.0)

    # fused per-agent hidden layer: one wide matmul for all agents
    a = jnp.dot(h, whc_ref[...], preferred_element_type=jnp.float32) + bhc_ref[...]
    a = jnp.maximum(a, 0.0)

    # fused heads: block-diagonal weight -> all agents' logits in one MXU pass
    logits = jnp.dot(a, wob_ref[...], preferred_element_type=jnp.float32) + boc_ref[...]

    # per-agent softmax over each action_num-wide lane segment, stored directly
    # into its static output segment (no concat epilogue).
    for i in range(n_agents):
        lg = logits[:, i * action_num:(i + 1) * action_num]
        m = jnp.max(lg, axis=-1, keepdims=True)
        e = jnp.exp(lg - m)
        denom = jnp.sum(e, axis=-1, keepdims=True)
        # exact reciprocal (keeps 1e-5 accuracy); approx=True would be cheaper
        # (pure EUP vrcp) but ~2^-12 rel error.
        probs = e * pl.reciprocal(denom, approx=False)
        out_ref[:, i * action_num:(i + 1) * action_num] = probs.astype(out_ref.dtype)


# --------------------------- parameter fusion -------------------------------
def fuse_params(params, lane=LANE):
    """One-time weight fusion + zero-padding of hidden dims to lane multiples."""
    w1, b1 = params["w1"], params["b1"]
    w2, b2 = params["w2"], params["b2"]
    wh, bh, wo, bo = params["wh"], params["bh"], params["wo"], params["bo"]
    n, h2, h_half = wh.shape
    h1 = w1.shape[1]
    action_num = wo.shape[-1]

    h1p = _round_up(h1, lane)
    h2p = _round_up(h2, lane)
    hhp = _round_up(h_half, lane)

    # trunk layer 1: pad output H1 -> H1p with zero cols / zero bias
    w1p = jnp.pad(w1, ((0, 0), (0, h1p - h1)))
    b1p = jnp.pad(b1, ((0, 0), (0, h1p - h1)))
    # trunk layer 2: pad input H1 -> H1p (zero rows) and output H2 -> H2p
    w2p = jnp.pad(w2, ((0, h1p - h1), (0, h2p - h2)))
    b2p = jnp.pad(b2, ((0, 0), (0, h2p - h2)))
    # per-agent hidden layers, padded then concatenated along lanes
    whp = jnp.pad(wh, ((0, 0), (0, h2p - h2), (0, hhp - h_half)))   # (n, H2p, Hhp)
    bhp = jnp.pad(bh, ((0, 0), (0, 0), (0, hhp - h_half)))          # (n, 1, Hhp)
    whc = jnp.concatenate([whp[i] for i in range(n)], axis=-1)      # (H2p, n*Hhp)
    bhc = bhp.reshape(1, n * hhp)                                   # (1, n*Hhp)
    # heads: block-diagonal over agents; K rows zero-padded, output dim unpadded
    wop = jnp.pad(wo, ((0, 0), (0, hhp - h_half), (0, 0)))          # (n, Hhp, A)
    wob = block_diag(*[wop[i] for i in range(n)])                   # (n*Hhp, n*A)
    boc = bo.reshape(1, n * action_num)                             # (1, n*A)
    return {
        "w1": w1p, "b1": b1p,
        "w2": w2p, "b2": b2p,
        "whc": whc, "bhc": bhc, "wob": wob, "boc": boc,
        "n": n, "action_num": action_num,
    }


# ------------------------------- wrapper ----------------------------------
def _pick_batch_tile(batch):
    """Batch tile: big blocks for throughput, >=2 blocks when possible (v7x)."""
    if batch <= MAX_BATCH_BLOCK:
        tb = _round_up(pl.cdiv(batch, 2), 8)   # aim for 2 grid steps, 8-sublane aligned
        if tb >= batch:
            tb = batch                         # too small to split usefully
    else:
        tb = MAX_BATCH_BLOCK
    return tb


def discrete_policy_forward_packed(x, fused):
    """x: (batch, n, state_dim) f32. Returns packed probs (batch, n*action_num)."""
    batch = x.shape[0]
    n = fused["n"]
    action_num = fused["action_num"]
    x_flat = x.reshape(batch, -1)                  # == x.view(x.shape[0], -1)
    in_dim = x_flat.shape[1]

    # Ragged grid: no wrapper-side pad / slice.  Pallas masks the last block
    # (overhang reads unspecified -> may produce NaN in discarded rows only;
    # overhang writes discarded).  Softmax is row-wise, so valid rows are clean.
    tb = _pick_batch_tile(batch)
    grid = (pl.cdiv(batch, tb),)

    w1, b1, w2, b2 = fused["w1"], fused["b1"], fused["w2"], fused["b2"]
    whc, bhc, wob, boc = fused["whc"], fused["bhc"], fused["wob"], fused["boc"]

    def const2d(shape):
        # weights are tiny: keep the full array VMEM-resident for every grid step
        return pl.BlockSpec(shape, lambda b: (0, 0))

    kernel = functools.partial(_policy_kernel, n, action_num)

    out = pl.pallas_call(
        kernel,
        out_shape=jax.ShapeDtypeStruct((batch, n * action_num), jnp.float32),
        grid=grid,
        in_specs=[
            pl.BlockSpec((tb, in_dim), lambda b: (b, 0)),     # x: batch-tiled
            const2d(w1.shape), const2d(b1.shape),
            const2d(w2.shape), const2d(b2.shape),
            const2d(whc.shape), const2d(bhc.shape),
            const2d(wob.shape), const2d(boc.shape),
        ],
        out_specs=pl.BlockSpec((tb, n * action_num), lambda b: (b, 0)),
        compiler_params=pltpu.CompilerParams(
            dimension_semantics=("parallel",),                # megacore on v7x
            vmem_limit_bytes=32 * 1024 * 1024,                # covers v5e's 16 MiB default
        ),
    )(x_flat, w1, b1, w2, b2, whc, bhc, wob, boc)

    return out


def discrete_policy_forward(x, fused):
    """Matches module semantics: list of n arrays, each (batch, action_num)."""
    packed = discrete_policy_forward_packed(x, fused)
    a = fused["action_num"]
    return [packed[:, i * a:(i + 1) * a] for i in range(fused["n"])]


# --------------------------- parameter setup -------------------------------
def init_params(key):
    in_dim = N_AGENTS * STATE_DIM
    h1, h2 = HIDDEN
    h_half = h2 // 2
    ks = jax.random.split(key, 8)
    scale = 0.1
    params = {
        "w1": scale * jax.random.normal(ks[0], (in_dim, h1), jnp.float32),
        "b1": scale * jax.random.normal(ks[1], (1, h1), jnp.float32),
        "w2": scale * jax.random.normal(ks[2], (h1, h2), jnp.float32),
        "b2": scale * jax.random.normal(ks[3], (1, h2), jnp.float32),
        "wh": scale * jax.random.normal(ks[4], (N_AGENTS, h2, h_half), jnp.float32),
        "bh": scale * jax.random.normal(ks[5], (N_AGENTS, 1, h_half), jnp.float32),
        "wo": scale * jax.random.normal(ks[6], (N_AGENTS, h_half, ACTION_NUM), jnp.float32),
        "bo": scale * jax.random.normal(ks[7], (N_AGENTS, 1, ACTION_NUM), jnp.float32),
    }
    return params


# --------------------------- reference (plain JAX) --------------------------
def reference_forward(x, params):
    h = x.reshape(x.shape[0], -1)
    h = jax.nn.relu(h @ params["w1"] + params["b1"])
    h = jax.nn.relu(h @ params["w2"] + params["b2"])
    probs = []
    for i in range(N_AGENTS):
        a = jax.nn.relu(h @ params["wh"][i] + params["bh"][i])
        logits = a @ params["wo"][i] + params["bo"][i]
        probs.append(jax.nn.softmax(logits, axis=1))
    return probs


# --------------------------------- main -------------------------------------
if __name__ == "__main__":
    # TODO(synk): the rrl=True multi-head-attention branch depends on external
    # `args` and is not implemented; this covers the standard (rrl=False) path.
    key = jax.random.PRNGKey(0)
    k_x, k_p, k_x2 = jax.random.split(key, 3)
    x = jax.random.normal(k_x, (BATCH, N_AGENTS, STATE_DIM), jnp.float32)
    params = init_params(k_p)
    fused = fuse_params(params)   # one-time weight fusion/padding (outside the kernel call)

    out = discrete_policy_forward(x, fused)
    out = [jax.block_until_ready(o) for o in out]

    ref = reference_forward(x, params)
    for o, r in zip(out, ref):
        assert o.shape == (BATCH, ACTION_NUM)
        assert jnp.allclose(jnp.sum(o, axis=1), 1.0, atol=1e-5)
        assert jnp.allclose(o, r, atol=1e-5, rtol=1e-5)

    # Exercise the multi-block ragged-grid path (batch % tb != 0) and verify
    # that overhang rows do not leak NaN/garbage into valid rows.
    batch2 = 100
    x2 = jax.random.normal(k_x2, (batch2, N_AGENTS, STATE_DIM), jnp.float32)
    out2 = discrete_policy_forward(x2, fused)
    out2 = [jax.block_until_ready(o) for o in out2]
    ref2 = reference_forward(x2, params)
    for o, r in zip(out2, ref2):
        assert o.shape == (batch2, ACTION_NUM)
        assert jnp.all(jnp.isfinite(o))
        assert jnp.allclose(jnp.sum(o, axis=1), 1.0, atol=1e-5)
        assert jnp.allclose(o, r, atol=1e-5, rtol=1e-5)

    print("KERNEL_OK")
</pallas_src>

<mosaic_0001>
module attributes {stable_mosaic.version = 11 : i64} {
  func.func @_policy_kernel(%arg0: i32, %arg1: memref<2x32xf32, #tpu.memory_space<vmem>>, %arg2: memref<32x128xf32, #tpu.memory_space<vmem>>, %arg3: memref<1x128xf32, #tpu.memory_space<vmem>>, %arg4: memref<128x128xf32, #tpu.memory_space<vmem>>, %arg5: memref<1x128xf32, #tpu.memory_space<vmem>>, %arg6: memref<128x256xf32, #tpu.memory_space<vmem>>, %arg7: memref<1x256xf32, #tpu.memory_space<vmem>>, %arg8: memref<256x12xf32, #tpu.memory_space<vmem>>, %arg9: memref<1x12xf32, #tpu.memory_space<vmem>>, %arg10: memref<2x12xf32, #tpu.memory_space<vmem>>) attributes {dimension_semantics = [#tpu.dimension_semantics<parallel>], iteration_bounds = array<i64: 1>, scalar_prefetch = 0 : i64, scratch_operands = 0 : i64, tpu.core_type = #tpu.core_type<tc>, window_params = [{transform_indices = @transform_0, window_bounds = array<i64: 2, 32>}, {pipeline_mode = #tpu.pipeline_mode<synchronous>, transform_indices = @transform_1, window_bounds = array<i64: 32, 128>}, {pipeline_mode = #tpu.pipeline_mode<synchronous>, transform_indices = @transform_2, window_bounds = array<i64: 1, 128>}, {pipeline_mode = #tpu.pipeline_mode<synchronous>, transform_indices = @transform_3, window_bounds = array<i64: 128, 128>}, {pipeline_mode = #tpu.pipeline_mode<synchronous>, transform_indices = @transform_4, window_bounds = array<i64: 1, 128>}, {pipeline_mode = #tpu.pipeline_mode<synchronous>, transform_indices = @transform_5, window_bounds = array<i64: 128, 256>}, {pipeline_mode = #tpu.pipeline_mode<synchronous>, transform_indices = @transform_6, window_bounds = array<i64: 1, 256>}, {pipeline_mode = #tpu.pipeline_mode<synchronous>, transform_indices = @transform_7, window_bounds = array<i64: 256, 12>}, {pipeline_mode = #tpu.pipeline_mode<synchronous>, transform_indices = @transform_8, window_bounds = array<i64: 1, 12>}, {transform_indices = @transform_9, window_bounds = array<i64: 2, 12>}]} {
    %c0 = arith.constant 0 : index
    %c0_0 = arith.constant 0 : index
    %0 = vector.load %arg1[%c0, %c0_0] : memref<2x32xf32, #tpu.memory_space<vmem>>, vector<2x32xf32>
    %c0_1 = arith.constant 0 : index
    %c0_2 = arith.constant 0 : index
    %1 = vector.load %arg2[%c0_1, %c0_2] : memref<32x128xf32, #tpu.memory_space<vmem>>, vector<32x128xf32>
    %cst = arith.constant dense<0.000000e+00> : vector<2x128xf32>
    %2 = tpu.matmul %0, %1, %cst {dimension_numbers = #tpu.dot_dimension_numbers<[1], [0], [0], [1], [0, 0, 1, 1], [], []>} : vector<2x32xf32>, vector<32x128xf32>, vector<2x128xf32> -> vector<2x128xf32>
    %c0_3 = arith.constant 0 : index
    %c0_4 = arith.constant 0 : index
    %3 = vector.load %arg3[%c0_3, %c0_4] : memref<1x128xf32, #tpu.memory_space<vmem>>, vector<1x128xf32>
    %4 = vector.broadcast %3 : vector<1x128xf32> to vector<2x128xf32>
    %5 = arith.addf %2, %4 : vector<2x128xf32>
    %cst_5 = arith.constant 0.000000e+00 : f32
    %6 = vector.broadcast %cst_5 : f32 to vector<2x128xf32>
    %7 = arith.maximumf %5, %6 : vector<2x128xf32>
    %c0_6 = arith.constant 0 : index
    %c0_7 = arith.constant 0 : index
    %8 = vector.load %arg4[%c0_6, %c0_7] : memref<128x128xf32, #tpu.memory_space<vmem>>, vector<128x128xf32>
    %cst_8 = arith.constant dense<0.000000e+00> : vector<2x128xf32>
    %9 = tpu.matmul %7, %8, %cst_8 {dimension_numbers = #tpu.dot_dimension_numbers<[1], [0], [0], [1], [0, 0, 1, 1], [], []>} : vector<2x128xf32>, vector<128x128xf32>, vector<2x128xf32> -> vector<2x128xf32>
    %c0_9 = arith.constant 0 : index
    %c0_10 = arith.constant 0 : index
    %10 = vector.load %arg5[%c0_9, %c0_10] : memref<1x128xf32, #tpu.memory_space<vmem>>, vector<1x128xf32>
    %11 = vector.broadcast %10 : vector<1x128xf32> to vector<2x128xf32>
    %12 = arith.addf %9, %11 : vector<2x128xf32>
    %cst_11 = arith.constant 0.000000e+00 : f32
    %13 = vector.broadcast %cst_11 : f32 to vector<2x128xf32>
    %14 = arith.maximumf %12, %13 : vector<2x128xf32>
    %c0_12 = arith.constant 0 : index
    %c0_13 = arith.constant 0 : index
    %15 = vector.load %arg6[%c0_12, %c0_13] : memref<128x256xf32, #tpu.memory_space<vmem>>, vector<128x256xf32>
    %cst_14 = arith.constant dense<0.000000e+00> : vector<2x256xf32>
    %16 = tpu.matmul %14, %15, %cst_14 {dimension_numbers = #tpu.dot_dimension_numbers<[1], [0], [0], [1], [0, 0, 1, 1], [], []>} : vector<2x128xf32>, vector<128x256xf32>, vector<2x256xf32> -> vector<2x256xf32>
    %c0_15 = arith.constant 0 : index
    %c0_16 = arith.constant 0 : index
    %17 = vector.load %arg7[%c0_15, %c0_16] : memref<1x256xf32, #tpu.memory_space<vmem>>, vector<1x256xf32>
    %18 = vector.broadcast %17 : vector<1x256xf32> to vector<2x256xf32>
    %19 = arith.addf %16, %18 : vector<2x256xf32>
    %cst_17 = arith.constant 0.000000e+00 : f32
    %20 = vector.broadcast %cst_17 : f32 to vector<2x256xf32>
    %21 = arith.maximumf %19, %20 : vector<2x256xf32>
    %c0_18 = arith.constant 0 : index
    %c0_19 = arith.constant 0 : index
    %22 = vector.load %arg8[%c0_18, %c0_19] : memref<256x12xf32, #tpu.memory_space<vmem>>, vector<256x12xf32>
    %cst_20 = arith.constant dense<0.000000e+00> : vector<2x12xf32>
    %23 = tpu.matmul %21, %22, %cst_20 {dimension_numbers = #tpu.dot_dimension_numbers<[1], [0], [0], [1], [0, 0, 1, 1], [], []>} : vector<2x256xf32>, vector<256x12xf32>, vector<2x12xf32> -> vector<2x12xf32>
    %c0_21 = arith.constant 0 : index
    %c0_22 = arith.constant 0 : index
    %24 = vector.load %arg9[%c0_21, %c0_22] : memref<1x12xf32, #tpu.memory_space<vmem>>, vector<1x12xf32>
    %25 = vector.broadcast %24 : vector<1x12xf32> to vector<2x12xf32>
    %26 = arith.addf %23, %25 : vector<2x12xf32>
    %27 = vector.extract_strided_slice %26 {offsets = [0, 0], sizes = [2, 6], strides = [1, 1]} : vector<2x12xf32> to vector<2x6xf32>
    %cst_23 = arith.constant dense<0xFF800000> : vector<2xf32>
    %28 = vector.multi_reduction <maximumf>, %27, %cst_23 [1] : vector<2x6xf32> to vector<2xf32>
    %29 = vector.shape_cast %28 : vector<2xf32> to vector<2x1xf32>
    %30 = vector.broadcast %29 : vector<2x1xf32> to vector<2x6xf32>
    %31 = arith.subf %27, %30 : vector<2x6xf32>
    %32 = math.exp %31 : vector<2x6xf32>
    %cst_24 = arith.constant dense<0.000000e+00> : vector<2xf32>
    %33 = vector.multi_reduction <add>, %32, %cst_24 [1] : vector<2x6xf32> to vector<2xf32>
    %34 = vector.shape_cast %33 : vector<2xf32> to vector<2x1xf32>
    %35 = tpu.reciprocal %34 : vector<2x1xf32> -> vector<2x1xf32>
    %36 = vector.broadcast %35 : vector<2x1xf32> to vector<2x6xf32>
    %37 = arith.mulf %32, %36 : vector<2x6xf32>
    %c0_25 = arith.constant 0 : index
    %c0_26 = arith.constant 0 : index
    %38 = vector.load %arg10[%c0_25, %c0_26] : memref<2x12xf32, #tpu.memory_space<vmem>>, vector<2x6xf32>
    tpu.vector_store %arg10[%c0_25, %c0_26], %37 {strides = array<i32>} : memref<2x12xf32, #tpu.memory_space<vmem>>, vector<2x6xf32>,
    %39 = vector.extract_strided_slice %26 {offsets = [0, 6], sizes = [2, 6], strides = [1, 1]} : vector<2x12xf32> to vector<2x6xf32>
    %cst_27 = arith.constant dense<0xFF800000> : vector<2xf32>
    %40 = vector.multi_reduction <maximumf>, %39, %cst_27 [1] : vector<2x6xf32> to vector<2xf32>
    %41 = vector.shape_cast %40 : vector<2xf32> to vector<2x1xf32>
    %42 = vector.broadcast %41 : vector<2x1xf32> to vector<2x6xf32>
    %43 = arith.subf %39, %42 : vector<2x6xf32>
    %44 = math.exp %43 : vector<2x6xf32>
    %cst_28 = arith.constant dense<0.000000e+00> : vector<2xf32>
    %45 = vector.multi_reduction <add>, %44, %cst_28 [1] : vector<2x6xf32> to vector<2xf32>
    %46 = vector.shape_cast %45 : vector<2xf32> to vector<2x1xf32>
    %47 = tpu.reciprocal %46 : vector<2x1xf32> -> vector<2x1xf32>
    %48 = vector.broadcast %47 : vector<2x1xf32> to vector<2x6xf32>
    %49 = arith.mulf %44, %48 : vector<2x6xf32>
    %c0_29 = arith.constant 0 : index
    %c6 = arith.constant 6 : index
    %50 = vector.load %arg10[%c0_29, %c6] : memref<2x12xf32, #tpu.memory_space<vmem>>, vector<2x6xf32>
    tpu.vector_store %arg10[%c0_29, %c6], %49 {strides = array<i32>} : memref<2x12xf32, #tpu.memory_space<vmem>>, vector<2x6xf32>,
    return
  }
  func.func @transform_0(%arg0: i32) -> (i32, i32) {
    %c0_i32 = arith.constant 0 : i32
    %c0_i32_0 = arith.constant 0 : i32
    return %arg0, %c0_i32 : i32, i32
  }
  func.func @transform_1(%arg0: i32) -> (i32, i32) {
    %c0_i32 = arith.constant 0 : i32
    %c0_i32_0 = arith.constant 0 : i32
    %c0_i32_1 = arith.constant 0 : i32
    return %c0_i32, %c0_i32_0 : i32, i32
  }
  func.func @transform_2(%arg0: i32) -> (i32, i32) {
    %c0_i32 = arith.constant 0 : i32
    %c0_i32_0 = arith.constant 0 : i32
    %c0_i32_1 = arith.constant 0 : i32
    return %c0_i32, %c0_i32_0 : i32, i32
  }
  func.func @transform_3(%arg0: i32) -> (i32, i32) {
    %c0_i32 = arith.constant 0 : i32
    %c0_i32_0 = arith.constant 0 : i32
    %c0_i32_1 = arith.constant 0 : i32
    return %c0_i32, %c0_i32_0 : i32, i32
  }
  func.func @transform_4(%arg0: i32) -> (i32, i32) {
    %c0_i32 = arith.constant 0 : i32
    %c0_i32_0 = arith.constant 0 : i32
    %c0_i32_1 = arith.constant 0 : i32
    return %c0_i32, %c0_i32_0 : i32, i32
  }
  func.func @transform_5(%arg0: i32) -> (i32, i32) {
    %c0_i32 = arith.constant 0 : i32
    %c0_i32_0 = arith.constant 0 : i32
    %c0_i32_1 = arith.constant 0 : i32
    return %c0_i32, %c0_i32_0 : i32, i32
  }
  func.func @transform_6(%arg0: i32) -> (i32, i32) {
    %c0_i32 = arith.constant 0 : i32
    %c0_i32_0 = arith.constant 0 : i32
    %c0_i32_1 = arith.constant 0 : i32
    return %c0_i32, %c0_i32_0 : i32, i32
  }
  func.func @transform_7(%arg0: i32) -> (i32, i32) {
    %c0_i32 = arith.constant 0 : i32
    %c0_i32_0 = arith.constant 0 : i32
    %c0_i32_1 = arith.constant 0 : i32
    return %c0_i32, %c0_i32_0 : i32, i32
  }
  func.func @transform_8(%arg0: i32) -> (i32, i32) {
    %c0_i32 = arith.constant 0 : i32
    %c0_i32_0 = arith.constant 0 : i32
    %c0_i32_1 = arith.constant 0 : i32
    return %c0_i32, %c0_i32_0 : i32, i32
  }
  func.func @transform_9(%arg0: i32) -> (i32, i32) {
    %c0_i32 = arith.constant 0 : i32
    %c0_i32_0 = arith.constant 0 : i32
    return %arg0, %c0_i32 : i32, i32
  }
}

</mosaic_0001>

<bundles_post_ra>
// kernel: tpu_custom_call.1
= control target key start
LH: loop header
LB: loop body
LE: loop exit
PB: predicated region body
PF: predicated region fallthrough
CT: control target
= control target key end

     0   :  { %14 = vsyncpa [#allocation3], 0  ;;  %s1071_s0 = inlined_call_operand.vmem [shape: f32[2,32], index: 0, kind: input, shape index: {}]   ;;  %s1072_s1 = inlined_call_operand.vmem [shape: f32[32,128], index: 1, kind: input, shape index: {}]   ;;  %s1073_s2 = inlined_call_operand.vmem [shape: f32[1,128], index: 2, kind: input, shape index: {}]   ;;  %s1074_s3 = inlined_call_operand.hbm [shape: f32[128,128], index: 3, kind: input, shape index: {}]   ;;  %s1075_s4 = inlined_call_operand.vmem [shape: f32[1,128], index: 4, kind: input, shape index: {}]   ;;  %s1076_s5 = inlined_call_operand.vmem [shape: f32[128,256], index: 5, kind: input, shape index: {}]   ;;  %s1077_s6 = inlined_call_operand.vmem [shape: f32[1,256], index: 6, kind: input, shape index: {}]   ;;  %s1078_s7 = inlined_call_operand.vmem [shape: f32[256,12], index: 7, kind: input, shape index: {}]   ;;  %s1079_s8 = inlined_call_operand.vmem [shape: f32[1,12], index: 8, kind: input, shape index: {}]   ;;  %s1080_s9 = inlined_call_operand.hbm [shape: f32[2,12], index: 9, kind: output, shape index: {}]  }
   0x1   :  { %15 = vsyncpa [#allocation4], 0  ;;  %s764_s30 = smov [#allocation2]   ;;  %s716_s13 = scalar_lea.hbm %s1074_s3, 2048 }
   0x2   :  { %s27_s10 = sshll.u32 %s764_s30, 4  ;;  %p717_p0 = scmp.ne.s32.totalorder %s1074_s3, %s716_s13  ;;  %s28_s10 = int_to_ptr.vmem [resolvable:$true] %s27_s10 }
   0x3   :  { %p720_p1 = scmp.lt.u32.totalorder %s716_s13, %s1074_s3 }
   0x5   :  { %p722_p2 = pnand %p720_p1, %p717_p0 }
   0x7   :  { %725 = shalt.err (!%p722_p2)
}
   0x8   :  { %s726_s18 = scalar_lea.vmem %s28_s10, 2048  ;;  %p731_p4 = scmp.lt.s32.totalorder %s28_s10, %s28_s10 }
   0x9   :  { %p727_p3 = scmp.ne.s32.totalorder %s28_s10, %s726_s18  ;;  %p732_p5 = scmp.lt.s32.totalorder %s726_s18, %s726_s18 }
   0xb   :  { %p733_p6 = por %p732_p5, %p731_p4 }
   0xd   :  { %p734_p7 = pnand %p733_p6, %p727_p3 }
   0xf   :  { %737 = shalt.err (!%p734_p7)
}
  0x10   :  { %s765_s19 = smov 128   ;;  %s766_s20 = smov 8  }
  0x11   :  { %33 = dma.hbm_to_vmem [thread:$0]  %s1074_s3, 2048, %s28_s10, [#allocation3], %s765_s19, %s765_s19, %s766_s20  }
  0x12   :  { %760 = dma.done.wait [#allocation3], 2048  }
  0x13   :  { %761 = vsyncadd [#allocation3], 4294965248  ;;  %v767_v0 = vmov 0.0|0.0   ;;  %vm768_vm0 = vmmov 0   ;;  %v769_v1 = vmov 0.0   ;;  %v48_v2 = vld [vmem:[%s1072_s1] sm:$0xff] }
  0x14   :  { %606 = vmatprep.subr.bf16.mxu0 %v767_v0  ;;  %568 = vmatprep.mubr.msk.f32.mxu0 %vm768_vm0, %v769_v1  ;;  %v49_v3 = vld [vmem:[%s1072_s1 + $0x8] sm:$0xff]  ;;  %v50_v4 = vld [vmem:[%s1072_s1 + $0x10] sm:$0xff]  ;;  %v51_v6 = vld [vmem:[%s1072_s1 + $0x18] sm:$0xff]  ;;  %vm59_vm1 = vcmask 261120   ;;  %vm467_vm2 = vcmask 91184   ;;  %vm454_vm3 = vcmask 41984  }
  0x15   :  { %612 = vmatprep.subr.bf16.mxu1 %v767_v0  ;;  %603 = vmatprep.mubr.msk.f32.mxu1 %vm768_vm0, %v769_v1  ;;  %v607_v5 = vpack.c.bf16 %v49_v3, %v48_v2  ;;  %v134_v7 = vld [vmem:[#allocation2] sm:$0xff]  ;;  %v135_v8 = vld [vmem:[#allocation2 + $0x8] sm:$0xff]  ;;  %v136_v9 = vld [vmem:[#allocation2 + $0x10] sm:$0xff]  ;;  %v610_v11 = vpack.c.bf16 %v51_v6, %v50_v4 }
  0x16   :  { %v137_v10 = vld [vmem:[#allocation2 + $0x18] sm:$0xff]  ;;  %v613_v12 = vpack.c.bf16 %v135_v8, %v134_v7  ;;  %v138_v14 = vld [vmem:[#allocation2 + $0x20] sm:$0xff]  ;;  %v139_v15 = vld [vmem:[#allocation2 + $0x28] sm:$0xff] }
  0x17   :  { %608 = vmatpush3.bf16.msra.mxu0 %v607_v5  ;;  %v616_v13 = vpack.c.bf16 %v137_v10, %v136_v9  ;;  %v47_v16 = vld [vmem:[%s1071_s0] sm:$0x3]  ;;  %v619_v17 = vpack.c.bf16 %v139_v15, %v138_v14  ;;  %v140_v18 = vld [vmem:[#allocation2 + $0x30] sm:$0xff]  ;;  %v141_v19 = vld [vmem:[#allocation2 + $0x38] sm:$0xff] }
  0x18   :  { %609 = vmatprep.subr.bf16.mxu0 %v767_v0  ;;  %614 = vmatpush3.bf16.msra.mxu1 %v613_v12  ;;  %v622_v20 = vpack.c.bf16 %v141_v19, %v140_v18  ;;  %v142_v21 = vld [vmem:[#allocation2 + $0x40] sm:$0xff]  ;;  %v143_v22 = vld [vmem:[#allocation2 + $0x48] sm:$0xff]  ;;  %v144_v24 = vld [vmem:[#allocation2 + $0x50] sm:$0xff] }
  0x19   :  { %615 = vmatprep.subr.bf16.mxu1 %v767_v0  ;;  %v625_v23 = vpack.c.bf16 %v143_v22, %v142_v21  ;;  %v145_v25 = vld [vmem:[#allocation2 + $0x58] sm:$0xff]  ;;  %v146_v27 = vld [vmem:[#allocation2 + $0x60] sm:$0xff]  ;;  %v147_v28 = vld [vmem:[#allocation2 + $0x68] sm:$0xff] }
  0x1a   :  { %v628_v26 = vpack.c.bf16 %v145_v25, %v144_v24  ;;  %v631_v29 = vpack.c.bf16 %v147_v28, %v146_v27  ;;  %v148_v30 = vld [vmem:[#allocation2 + $0x70] sm:$0xff]  ;;  %v149_v31 = vld [vmem:[#allocation2 + $0x78] sm:$0xff]  ;;  %v229_v33 = vld [vmem:[%s1076_s5 + $0x8] sm:$0xff] }
  0x1b   :  { %611 = vmatpush3.bf16.msra.mxu0 %v610_v11  ;;  %v634_v32 = vpack.c.bf16 %v149_v31, %v148_v30  ;;  %v231_v34 = vld [vmem:[%s1076_s5 + $0x18] sm:$0xff]  ;;  %v228_v35 = vld [vmem:[%s1076_s5] sm:$0xff]  ;;  %v230_v37 = vld [vmem:[%s1076_s5 + $0x10] sm:$0xff] }
  0x1c   :  { %617 = vmatpush3.bf16.msra.mxu1 %v616_v13  ;;  %v636_v36 = vpack.c.bf16 %v231_v34, %v229_v33  ;;  %v233_v38 = vld [vmem:[%s1076_s5 + $0x28] sm:$0xff]  ;;  %v235_v39 = vld [vmem:[%s1076_s5 + $0x38] sm:$0xff]  ;;  %v638_v40 = vpack.c.bf16 %v230_v37, %v228_v35  ;;  %v232_v42 = vld [vmem:[%s1076_s5 + $0x20] sm:$0xff] }
  0x1d   :  { %618 = vmatprep.subr.bf16.mxu1 %v767_v0  ;;  %v640_v41 = vpack.c.bf16 %v235_v39, %v233_v38  ;;  %v234_v43 = vld [vmem:[%s1076_s5 + $0x30] sm:$0xff]  ;;  %v237_v44 = vld [vmem:[%s1076_s5 + $0x48] sm:$0xff]  ;;  %v239_v45 = vld [vmem:[%s1076_s5 + $0x58] sm:$0xff] }
  0x1e   :  { %569 = vmatmul.mubr.msk.f32.vlgmr.msra.gmra.mrb[0].mxu0 %vm59_vm1, %v47_v16  ;;  %637 = vmatprep.subr.bf16.mxu0 %v636_v36  ;;  %v642_v46 = vpack.c.bf16 %v234_v43, %v232_v42  ;;  %v644_v47 = vpack.c.bf16 %v239_v45, %v237_v44  ;;  %v236_v48 = vld [vmem:[%s1076_s5 + $0x40] sm:$0xff]  ;;  %v238_v49 = vld [vmem:[%s1076_s5 + $0x50] sm:$0xff]  ;;  %v241_v50 = vld [vmem:[%s1076_s5 + $0x68] sm:$0xff] }
  0x1f   :  { %336 = vmatprep.mubr.f32.mxu0 %v769_v1  ;;  %639 = vmatpush1.bf16.msra.mxu0 %v638_v40  ;;  %v243_v51 = vld [vmem:[%s1076_s5 + $0x78] sm:$0xff]  ;;  %v646_v52 = vpack.c.bf16 %v238_v49, %v236_v48  ;;  %v240_v54 = vld [vmem:[%s1076_s5 + $0x60] sm:$0xff]  ;;  %v242_v55 = vld [vmem:[%s1076_s5 + $0x70] sm:$0xff] }
  0x20   :  { %620 = vmatpush3.bf16.msra.mxu1 %v619_v17  ;;  %641 = vmatprep.subr.bf16.mxu0 %v640_v41  ;;  %v648_v53 = vpack.c.bf16 %v243_v51, %v241_v50  ;;  %v245_v56 = vld [vmem:[%s1076_s5 + $0x88] sm:$0xff]  ;;  %v247_v57 = vld [vmem:[%s1076_s5 + $0x98] sm:$0xff]  ;;  %v650_v58 = vpack.c.bf16 %v242_v55, %v240_v54  ;;  %v244_v60 = vld [vmem:[%s1076_s5 + $0x80] sm:$0xff] }
  0x21   :  { %621 = vmatprep.subr.bf16.mxu1 %v767_v0  ;;  %v652_v59 = vpack.c.bf16 %v247_v57, %v245_v56  ;;  %v246_v61 = vld [vmem:[%s1076_s5 + $0x90] sm:$0xff]  ;;  %v249_v62 = vld [vmem:[%s1076_s5 + $0xa8] sm:$0xff]  ;;  %v251_v63 = vld [vmem:[%s1076_s5 + $0xb8] sm:$0xff] }
  0x22   :  { %v656_v1 = vpack.c.bf16 %v251_v63, %v249_v62  ;;  %v248_v2 = vld [vmem:[%s1076_s5 + $0xa0] sm:$0xff]  ;;  %v250_v3 = vld [vmem:[%s1076_s5 + $0xb0] sm:$0xff]  ;;  %v253_v4 = vld [vmem:[%s1076_s5 + $0xc8] sm:$0xff] }
  0x23   :  { %643 = vmatpush1.bf16.msra.mxu0 %v642_v46  ;;  %v255_v5 = vld [vmem:[%s1076_s5 + $0xd8] sm:$0xff]  ;;  %v658_v6 = vpack.c.bf16 %v250_v3, %v248_v2  ;;  %v252_v8 = vld [vmem:[%s1076_s5 + $0xc0] sm:$0xff]  ;;  %v254_v9 = vld [vmem:[%s1076_s5 + $0xd0] sm:$0xff] }
  0x24   :  { %623 = vmatpush3.bf16.msra.mxu1 %v622_v20  ;;  %645 = vmatprep.subr.bf16.mxu0 %v644_v47  ;;  %v660_v7 = vpack.c.bf16 %v255_v5, %v253_v4  ;;  %v662_v10 = vpack.c.bf16 %v254_v9, %v252_v8  ;;  %v499_v11 = vld [vmem:[%s1073_s2] ss:$0 sm:$0xff]  ;;  %v257_v16 = vld [vmem:[%s1076_s5 + $0xe8] sm:$0xff]  ;;  %v259_v17 = vld [vmem:[%s1076_s5 + $0xf8] sm:$0xff] }
  0x25   :  { %624 = vmatprep.subr.bf16.mxu1 %v767_v0  ;;  %v664_v18 = vpack.c.bf16 %v259_v17, %v257_v16  ;;  %v256_v19 = vld [vmem:[%s1076_s5 + $0xe0] sm:$0xff]  ;;  %v258_v20 = vld [vmem:[%s1076_s5 + $0xf0] sm:$0xff]  ;;  %v364_v28 = vld [vmem:[%s1078_s7 + $0x98] sm:$0xff] }
  0x26   :  { %v666_v21 = vpack.c.bf16 %v258_v20, %v256_v19  ;;  %v361_v22 = vld [vmem:[%s1078_s7 + $0x80] sm:$0xff]  ;;  %v363_v27 = vld [vmem:[%s1078_s7 + $0x90] sm:$0xff]  ;;  %v366_v34 = vld [vmem:[%s1078_s7 + $0xa8] sm:$0xff] }
  0x27   :  { %647 = vmatpush1.bf16.msra.mxu0 %v646_v52  ;;  %v345_v24 = vld [vmem:[%s1078_s7] sm:$0xff]  ;;  %v672_v30 = vpack.c.bf16 %v364_v28, %v363_v27  ;;  %v347_v31 = vld [vmem:[%s1078_s7 + $0x10] sm:$0xff]  ;;  %v350_v38 = vld [vmem:[%s1078_s7 + $0x28] sm:$0xff] }
  0x28   :  { %626 = vmatpush3.bf16.msra.mxu1 %v625_v23  ;;  %649 = vmatprep.subr.bf16.mxu0 %v648_v53  ;;  %v362_v23 = vld [vmem:[%s1078_s7 + $0x88] sm:$0xff]  ;;  %v365_v33 = vld [vmem:[%s1078_s7 + $0xa0] sm:$0xff]  ;;  %v367_v39 = vld [vmem:[%s1078_s7 + $0xb0] sm:$0xff] }
  0x29   :  { %627 = vmatprep.subr.bf16.mxu1 %v767_v0  ;;  %v668_v25 = vpack.c.bf16 %v362_v23, %v361_v22  ;;  %v676_v36 = vpack.c.bf16 %v366_v34, %v365_v33  ;;  %v349_v37 = vld [vmem:[%s1078_s7 + $0x20] sm:$0xff]  ;;  %v368_v40 = vld [vmem:[%s1078_s7 + $0xb8] sm:$0xff]  ;;  %v351_v43 = vld [vmem:[%s1078_s7 + $0x30] sm:$0xff] }
  0x2a   :  { %v678_v41 = vpack.c.bf16 %v350_v38, %v349_v37  ;;  %v680_v42 = vpack.c.bf16 %v368_v40, %v367_v39  ;;  %v352_v44 = vld [vmem:[%s1078_s7 + $0x38] sm:$0xff]  ;;  %v369_v45 = vld [vmem:[%s1078_s7 + $0xc0] sm:$0xff]  ;;  %v370_v46 = vld [vmem:[%s1078_s7 + $0xc8] sm:$0xff] }
  0x2b   :  { %651 = vmatpush1.bf16.msra.mxu0 %v650_v58  ;;  %v682_v47 = vpack.c.bf16 %v352_v44, %v351_v43  ;;  %v684_v48 = vpack.c.bf16 %v370_v46, %v369_v45  ;;  %v353_v49 = vld [vmem:[%s1078_s7 + $0x40] sm:$0xff]  ;;  %v354_v50 = vld [vmem:[%s1078_s7 + $0x48] sm:$0xff]  ;;  %v371_v51 = vld [vmem:[%s1078_s7 + $0xd0] sm:$0xff] }
  0x2c   :  { %629 = vmatpush3.bf16.msra.mxu1 %v628_v26  ;;  %653 = vmatprep.subr.bf16.mxu0 %v652_v59  ;;  %v346_v26 = vld [vmem:[%s1078_s7 + $0x8] sm:$0xff]  ;;  %v372_v52 = vld [vmem:[%s1078_s7 + $0xd8] sm:$0xff]  ;;  %v686_v53 = vpack.c.bf16 %v354_v50, %v353_v49  ;;  %v355_v55 = vld [vmem:[%s1078_s7 + $0x50] sm:$0xff] }
  0x2d   :  { %630 = vmatprep.subr.bf16.mxu1 %v767_v0  ;;  %v688_v54 = vpack.c.bf16 %v372_v52, %v371_v51  ;;  %v356_v56 = vld [vmem:[%s1078_s7 + $0x58] sm:$0xff]  ;;  %v373_v57 = vld [vmem:[%s1078_s7 + $0xe0] sm:$0xff]  ;;  %v374_v58 = vld [vmem:[%s1078_s7 + $0xe8] sm:$0xff] }
  0x2e   :  { %v690_v59 = vpack.c.bf16 %v356_v56, %v355_v55  ;;  %v357_v2 = vld [vmem:[%s1078_s7 + $0x60] sm:$0xff]  ;;  %v358_v3 = vld [vmem:[%s1078_s7 + $0x68] sm:$0xff]  ;;  %v375_v5 = vld [vmem:[%s1078_s7 + $0xf0] sm:$0xff] }
  0x2f   :  { %v694_v4 = vpack.c.bf16 %v358_v3, %v357_v2  ;;  %v359_v8 = vld [vmem:[%s1078_s7 + $0x70] sm:$0xff]  ;;  %v360_v9 = vld [vmem:[%s1078_s7 + $0x78] sm:$0xff] }
  0x30   :  { %632 = vmatpush3.bf16.msra.mxu1 %v631_v29  ;;  %v670_v29 = vpack.c.bf16 %v346_v26, %v345_v24 }
  0x31   :  { %633 = vmatprep.subr.bf16.mxu1 %v767_v0  ;;  %v654_v0 = vpack.c.bf16 %v246_v61, %v244_v60  ;;  %v692_v60 = vpack.c.bf16 %v374_v58, %v373_v57  ;;  %v501_v61 = vld [vmem:[%s1075_s4] ss:$0 sm:$0xff] }
  0x33   :  { %655 = vmatpush1.bf16.msra.mxu0 %v654_v0 }
  0x34   :  { %635 = vmatpush3.bf16.msra.mxu1 %v634_v32  ;;  %657 = vmatprep.subr.bf16.mxu0 %v656_v1  ;;  %v348_v32 = vld [vmem:[%s1078_s7 + $0x18] sm:$0xff] }
  0x35   :  { %669 = vmatprep.subr.bf16.mxu1 %v668_v25  ;;  %v674_v35 = vpack.c.bf16 %v348_v32, %v347_v31  ;;  %v502_v25 = vld [vmem:[%s1079_s8] ss:$0 sm:$0xff]  ;;  %s771_s8 = smov [#allocation5]  }
  0x36   :  { %s490_s17 = sshll.u32 %s771_s8, 4  ;;  %s491_s17 = int_to_ptr.vmem [resolvable:$true] %s490_s17 }
  0x37   :  { %659 = vmatpush1.bf16.msra.mxu0 %v658_v6  ;;  %v376_v6 = vld [vmem:[%s1078_s7 + $0xf8] sm:$0xff]  ;;  %s738_s18 = scalar_lea.vmem %s491_s17, 32  ;;  %p743_p9 = scmp.lt.s32.totalorder %s491_s17, %s491_s17 }
  0x38   :  { %661 = vmatprep.subr.bf16.mxu0 %v660_v7  ;;  %v696_v7 = vpack.c.bf16 %v376_v6, %v375_v5  ;;  %p739_p8 = scmp.ne.s32.totalorder %s491_s17, %s738_s18  ;;  %p744_p10 = scmp.lt.s32.totalorder %s738_s18, %s738_s18 }
  0x3a   :  { %p745_p11 = por %p744_p10, %p743_p9 }
  0x3b   :  { %663 = vmatpush1.bf16.msra.mxu0 %v662_v10  ;;  %v698_v10 = vpack.c.bf16 %v360_v9, %v359_v8 }
  0x3c   :  { %665 = vmatprep.subr.bf16.mxu0 %v664_v18  ;;  %p746_p12 = pnand %p745_p11, %p739_p8 }
  0x3f   :  { %667 = vmatpush1.bf16.msra.mxu0 %v666_v21 }
  0xf1   :  { %v129_v12 = vpop.f32.mrb[0].mxu0 }
  0xf2   :  { %v130_v13 = vadd.f32 %v499_v11, %v129_v12  ;;  %v570_v14 = vpop.f32.mrb[1].mxu0  ;;  %v262_v11 = vlaneseq }
  0xf3   :  { %v260_v14 = vld [vmem:[%s1077_s6] sm:$0x3]  ;;  %s770_s6 = smov 122  }
  0xf4   :  { %v133_v15 = vmax.f32 %v130_v13, 0.0  ;;  %v263_v12 = vshrl.u32 %v262_v11, 7 }
  0xf6   :  { %604 = vmatmul.mubr.f32.vlgmr.msra.gmra.mrb[0].mxu1 %v133_v15  ;;  %v264_v13 = vsub.s32 0, %v263_v12  ;;  %v268_v15 = vsub.s32 1, %v263_v12 }
  0xf7   :  { %671 = vmatpush3.bf16.msra.mxu1 %v670_v29 }
  0xf8   :  { %673 = vmatprep.subr.bf16.mxu1 %v672_v30  ;;  %v265_v16 = vrot.slane %v260_v14, %v264_v13  ;;  %v269_v17 = vrot.slane %v260_v14, %v268_v15 }
  0xfb   :  { %675 = vmatpush3.bf16.msra.mxu1 %v674_v35 }
  0xfc   :  { %677 = vmatprep.subr.bf16.mxu1 %v676_v36 }
  0xff   :  { %679 = vmatpush3.bf16.msra.mxu1 %v678_v41 }
 0x100   :  { %681 = vmatprep.subr.bf16.mxu1 %v680_v42 }
 0x103   :  { %683 = vmatpush3.bf16.msra.mxu1 %v682_v47 }
 0x104   :  { %685 = vmatprep.subr.bf16.mxu1 %v684_v48 }
 0x107   :  { %687 = vmatpush3.bf16.msra.mxu1 %v686_v53 }
 0x108   :  { %689 = vmatprep.subr.bf16.mxu1 %v688_v54 }
 0x10b   :  { %691 = vmatpush3.bf16.msra.mxu1 %v690_v59 }
 0x10c   :  { %693 = vmatprep.subr.bf16.mxu1 %v692_v60 }
 0x10f   :  { %695 = vmatpush3.bf16.msra.mxu1 %v694_v4 }
 0x110   :  { %697 = vmatprep.subr.bf16.mxu1 %v696_v7 }
 0x113   :  { %699 = vmatpush3.bf16.msra.mxu1 %v698_v10 }
 0x1c9   :  { %v223_v62 = vpop.f32.mrb[0].mxu1 }
 0x1ca   :  { %v224_v63 = vadd.f32 %v501_v61, %v223_v62  ;;  %v605_v0 = vpop.f32.mrb[1].mxu1 }
 0x1cc   :  { %v227_v1 = vmax.f32 %v224_v63, 0.0 }
 0x1ce   :  { %337 = vmatmul.mubr.f32.vlgmr.msra.gmra.mrb[2].mxu0 %v227_v1 }
 0x2a1   :  { %v338_v18 = vpop.f32.mrb[2].mxu0 }
 0x2a2   :  { %v339_v19 = vadd.f32 %v338_v18, %v265_v16  ;;  %v340_v20 = vpop.f32.mrb[3].mxu0 }
 0x2a3   :  { %v341_v21 = vadd.f32 %v340_v20, %v269_v17 }
 0x2a4   :  { %v343_v23 = vmax.f32 %v339_v19, 0.0 }
 0x2a5   :  { %v344_v22 = vmax.f32 %v341_v21, 0.0 }
 0x2a7   :  { %448 = vmatprep.mubr.f32.mxu1 %v344_v22 }
 0x2a8   :  { %449 = vmatmul.mubr.f32.vlgmr.msra.gmra.mrb[2].mxu1 %v343_v23 }
 0x37b   :  { %v557_v24 = vpop.f32.mrb[2].mxu1 }
 0x37c   :  { %v558_v26 = vpop.f32.mrb[3].mxu1 }
 0x37d   :  { %v559_v27 = vadd.f32 %v558_v26, %v557_v24 }
 0x37f   :  { %v451_v28 = vadd.f32 %v559_v27, %v502_v25 }
 0x381   :  { %v468_v29 = vsel %vm467_vm2, %v451_v28, -inf  ;;  %v455_v30 = vsel %vm454_vm3, %v451_v28, -inf }
 0x382   :  { %469 = vmax.xlane.f32.xlu0 %v468_v29 }
 0x386   :  { %456 = vmax.xlane.f32.xlu0 %v455_v30 }
 0x40f   :  { %v470_v31 = vpop.xlane.xlu0 %469 }
 0x410   :  { %v471_v32 = vsub.f32 %v451_v28, %v470_v31 }
 0x412   :  { %v472_v33 = vmul.f32 1.442695, %v471_v32 }
 0x413   :  { %v457_v35 = vpop.xlane.xlu0 %456 }
 0x414   :  { %708 = vpow2.f32 %v472_v33  ;;  %v458_v36 = vsub.f32 %v451_v28, %v457_v35 }
 0x416   :  { %v459_v37 = vmul.f32 1.442695, %v458_v36 }
 0x418   :  { %710 = vpow2.f32 %v459_v37 }
 0x41e   :  { %v709_v34 = vpop.eup %708 }
 0x41f   :  { %475 = vrot.lane.b32.xlu1 %v709_v34, %s770_s6 }
 0x422   :  { %v711_v38 = vpop.eup %710 }
 0x423   :  { %v461_v39 = vsel %vm454_vm3, %v711_v38, 0.0 }
 0x443   :  { %462 = vadd.xlane.f32.xlu1 %v461_v39 }
 0x491   :  { %v476_v40 = vpop.permute.xlu1 %475 }
 0x492   :  { %v478_v41 = vsel %vm454_vm3, %v476_v40, 0.0 }
 0x493   :  { %479 = vadd.xlane.f32.xlu0 %v478_v41 }
 0x4d0   :  { %v463_v42 = vpop.xlane.xlu1 %462 }
 0x4d1   :  { %712 = vrcp.f32 %v463_v42 }
 0x4db   :  { %v713_v43 = vpop.eup %712 }
 0x4dc   :  { %v465_v44 = vmul.f32 %v713_v43, %v711_v38 }
 0x4de   :  { %466 = vst.msk [vmem:[#allocation5] sm:$0x3] %vm454_vm3, %v465_v44 }
 0x520   :  { %v480_v45 = vpop.xlane.xlu0 %479 }
 0x521   :  { %714 = vrcp.f32 %v480_v45 }
 0x52b   :  { %v715_v46 = vpop.eup %714 }
 0x52c   :  { %v482_v47 = vmul.f32 %v715_v46, %v709_v34 }
 0x52e   :  { %483 = vst.msk [vmem:[#allocation5] sm:$0x3] %vm467_vm2, %v482_v47 }
 0x52f   :  { %749 = shalt.err (!%p746_p12)
}
 0x530   :  { %s750_s21 = scalar_lea.hbm %s1080_s9, 32 }
 0x531   :  { %p751_p13 = scmp.ne.s32.totalorder %s1080_s9, %s750_s21  ;;  %p754_p0 = scmp.lt.u32.totalorder %s750_s21, %s1080_s9 }
 0x533   :  { %p756_p1 = pnand %p754_p0, %p751_p13 }
 0x535   :  { %759 = shalt.err (!%p756_p1)
}
 0x536   :  { %493 = dma.vmem_to_hbm [thread:$0]  %s491_s17, 32, %s1080_s9, [#allocation4]  }
 0x537   :  { %762 = dma.done.wait [#allocation4], 32  }
 0x538   :  { %763 = vsyncadd [#allocation4], 4294967264 }
 0x539   :  { %497 = vsyncpa [#allocation3], 1 }
 0x53a   :  { %498 = vsyncpa [#allocation4], 1 }

</bundles_post_ra>
